<compile_context>
chip_gen: v5e
topology: v5e:2x2
jax: 0.10.0
libtpu: 0.0.40
codegen_flags: <defaults>
</compile_context>

<pallas_src>
import functools

import numpy as np
import jax
import jax.numpy as jnp
from jax.experimental import pallas as pl
from jax.experimental.pallas import tpu as pltpu

NEG_INF = -1e30


def _leaky_relu(x, slope=0.02):
    return jnp.where(x > 0, x, slope * x)


def _round_up(x, m):
    return ((x + m - 1) // m) * m


def _action_head_kernel(npts_ref,                     # SMEM (B,) int32 (scalar prefetch)
                        pe_ref,                        # (1, H, TILE_P) bf16
                        co_ref,                        # (1, 3, TILE_P) f32
                        hw1_ref, hb1_ref,              # (H, H), (H, 1)
                        hw2_ref, hb2_ref,              # (4, H), (4, 1)  (1/temp folded in row 0)
                        aw1_ref, ab1_ref,              # (H, H), (H, 1)
                        aw2_ref, ab2_ref,              # (5, H), (5, 1)
                        out_ref,                       # (1, 8, 1) = [xt(3)|quat(4)|open(1)]
                        m_sc, l_sc, acc_sc, mp_sc,     # VMEM scratch (online state)
                        *, tile_p):
    b = pl.program_id(0)
    p = pl.program_id(1)
    n_valid = npts_ref[b]

    @pl.when(p == 0)
    def _init():
        m_sc[...] = jnp.full_like(m_sc, NEG_INF)
        l_sc[...] = jnp.zeros_like(l_sc)
        acc_sc[...] = jnp.zeros_like(acc_sc)
        mp_sc[...] = jnp.full_like(mp_sc, NEG_INF)

    @pl.when(p * tile_p < n_valid)                     # skip fully padded point tiles
    def _accumulate():
        pe = pe_ref[0].astype(jnp.float32)             # (H, TILE_P) upcast bf16->f32

        # validity mask for this point tile, lane-dense (1, TILE_P)
        lane = jax.lax.broadcasted_iota(jnp.int32, (1, tile_p), 1) + p * tile_p
        valid = lane < n_valid

        # heatmap MLP, feature-major: (out,in) @ (in, TILE_P) on the MXU
        h1 = _leaky_relu(
            jnp.dot(hw1_ref[...], pe, preferred_element_type=jnp.float32)
            + hb1_ref[...])                            # (H, TILE_P)
        he = (jnp.dot(hw2_ref[...], h1, preferred_element_type=jnp.float32)
              + hb2_ref[...])                          # (4, TILE_P)

        # ---- online softmax over points (lane axis) --------------------------
        heat = jnp.where(valid, he[0:1, :], NEG_INF)   # (1, TILE_P)
        m_tile = jnp.max(heat, axis=1, keepdims=True)  # (1, 1)
        m_old = m_sc[...]
        m_new = jnp.maximum(m_old, m_tile)
        alpha = jnp.exp(m_old - m_new)
        pvec = jnp.where(valid, jnp.exp(heat - m_new), 0.0)   # (1, TILE_P)

        l_sc[...] = alpha * l_sc[...] + jnp.sum(pvec, axis=1, keepdims=True)
        new_coords = co_ref[0] + he[1:4, :]            # (3, TILE_P)
        acc_sc[...] = (alpha * acc_sc[...]
                       + jnp.sum(pvec * new_coords, axis=1, keepdims=True))
        m_sc[...] = m_new

        # ---- running max-pool of point embeddings (reduce == 'max') ----------
        pe_masked = jnp.where(valid, pe, NEG_INF)
        mp_sc[...] = jnp.maximum(mp_sc[...],
                                 jnp.max(pe_masked, axis=1, keepdims=True))

    @pl.when(p == pl.num_programs(1) - 1)
    def _finalize():
        has = (n_valid > 0).astype(jnp.float32)        # guard empty batches

        denom = jnp.maximum(l_sc[...], 1e-30)
        inv = pl.reciprocal(denom, approx=True)        # EUP slot
        inv = inv * (2.0 - denom * inv)                # one Newton step -> f32 accuracy
        xt = acc_sc[...] * inv * has                   # (3, 1)

        pc = mp_sc[...] * has                          # (H, 1), zeroed if empty
        a1 = _leaky_relu(
            jnp.dot(aw1_ref[...], pc, preferred_element_type=jnp.float32)
            + ab1_ref[...])
        ae = (jnp.dot(aw2_ref[...], a1, preferred_element_type=jnp.float32)
              + ab2_ref[...])                          # (5, 1)

        # rot_pred_type == 'quat': L2-normalize first 4 rows (rsqrt -> EUP)
        q = ae[0:4, :]
        q = q * jax.lax.rsqrt(
            jnp.maximum(jnp.sum(q * q, axis=0, keepdims=True), 1e-24))

        # direct slice stores (no lane concatenation)
        out_ref[0, 0:3, :] = xt
        out_ref[0, 3:7, :] = q
        out_ref[0, 7:8, :] = ae[4:5, :]


def action_head_forward(point_embeds, coords, npoints_in_batch, params,
                        temp=1.0, max_tile_p=512):
    """point_embeds: (N, H) f32, coords: (N, 3) f32, npoints_in_batch: list[int].

    params are (in,out) weights and (1,out) biases (x @ W + b convention)."""
    hw1, hb1, hw2, hb2, aw1, ab1, aw2, ab2 = params
    H = point_embeds.shape[1]

    npts_np = np.asarray(npoints_in_batch, np.int64)
    B = int(npts_np.shape[0])
    max_n = int(npts_np.max())

    # Point-tile sizing: single full tile if small, else 512 (multiple of 128).
    if max_n <= max_tile_p:
        tile_p = max(8, _round_up(max_n, 8))
        pmax = tile_p
    else:
        tile_p = max_tile_p
        pmax = _round_up(max_n, tile_p)
    n_ptiles = pmax // tile_p

    # ragged -> padded pack (points on the LANE axis), one vectorized scatter each
    starts = np.cumsum(npts_np) - npts_np
    bidx = np.repeat(np.arange(B), npts_np).astype(np.int32)
    lidx = (np.arange(int(npts_np.sum())) - np.repeat(starts, npts_np)).astype(np.int32)

    pe_t = jnp.zeros((B, H, pmax), jnp.bfloat16).at[bidx, :, lidx].set(
        point_embeds.astype(jnp.bfloat16))
    co_t = jnp.zeros((B, 3, pmax), jnp.float32).at[bidx, :, lidx].set(
        coords.astype(jnp.float32))
    npts = jnp.asarray(npts_np, jnp.int32)

    # kernel weight layout: (out, in) / (out, 1); fold 1/temp into heatmap row 0
    f32 = jnp.float32
    hw1_k, hb1_k = hw1.T.astype(f32), hb1.T.astype(f32)
    hw2_k, hb2_k = hw2.T.astype(f32), hb2.T.astype(f32)
    aw1_k, ab1_k = aw1.T.astype(f32), ab1.T.astype(f32)
    aw2_k, ab2_k = aw2.T.astype(f32), ab2.T.astype(f32)
    scale = jnp.concatenate([jnp.full((1, 1), 1.0 / float(temp), f32),
                             jnp.ones((3, 1), f32)], axis=0)
    hw2_k = hw2_k * scale
    hb2_k = hb2_k * scale

    def wspec(shape):
        return pl.BlockSpec(shape, lambda b, p, n: (0, 0))   # resident weights

    grid_spec = pltpu.PrefetchScalarGridSpec(
        num_scalar_prefetch=1,
        grid=(B, n_ptiles),
        in_specs=[
            pl.BlockSpec((1, H, tile_p), lambda b, p, n: (b, 0, p)),   # pe (bf16)
            pl.BlockSpec((1, 3, tile_p), lambda b, p, n: (b, 0, p)),   # coords
            wspec((H, H)), wspec((H, 1)),
            wspec((4, H)), wspec((4, 1)),
            wspec((H, H)), wspec((H, 1)),
            wspec((5, H)), wspec((5, 1)),
        ],
        out_specs=pl.BlockSpec((1, 8, 1), lambda b, p, n: (b, 0, 0)),
        scratch_shapes=[
            pltpu.VMEM((1, 1), jnp.float32),    # running max  m
            pltpu.VMEM((1, 1), jnp.float32),    # running sum  l
            pltpu.VMEM((3, 1), jnp.float32),    # running weighted-coord sum
            pltpu.VMEM((H, 1), jnp.float32),    # running max-pool of pe
        ],
    )

    # explicit VMEM budget: double-buffered tiles + intermediates + weights
    tile_bytes = tile_p * (H * 2 + 3 * 4)                 # bf16 pe + f32 co per tile
    inter_bytes = tile_p * (H + 8) * 4                    # f32 h1 / he intermediates
    w_bytes = 4 * (2 * H * H + 2 * H + 4 * H + 4 + 5 * H + 5)
    budget = 2 * 2 * tile_bytes + 2 * inter_bytes + 2 * w_bytes + (4 << 20)
    vmem_limit = int(min(max(budget, 8 << 20), 48 << 20))

    out = pl.pallas_call(
        functools.partial(_action_head_kernel, tile_p=tile_p),
        out_shape=jax.ShapeDtypeStruct((B, 8, 1), jnp.float32),
        grid_spec=grid_spec,
        compiler_params=pltpu.CompilerParams(
            dimension_semantics=("parallel", "arbitrary"),
            vmem_limit_bytes=vmem_limit),
    )(npts, pe_t, co_t, hw1_k, hb1_k, hw2_k, hb2_k, aw1_k, ab1_k, aw2_k, ab2_k)

    out = out.reshape(B, 8)
    return out[:, 0:3], out[:, 3:7], out[:, 7]


def reference_forward(point_embeds, coords, npoints_in_batch, params, temp=1.0):
    """Pure-JAX mirror of the PyTorch forward (ragged splits) for checking."""
    hw1, hb1, hw2, hb2, aw1, ab1, aw2, ab2 = params

    def mlp(x, w1, b1, w2, b2):
        h = x @ w1 + b1[0]
        h = jnp.where(h > 0, h, 0.02 * h)
        return h @ w2 + b2[0]

    he = mlp(point_embeds, hw1, hb1, hw2, hb2)
    xt_l, xr_l, xo_l = [], [], []
    off = 0
    for n in npoints_in_batch:
        h = jax.nn.softmax(he[off:off + n, 0] / temp)
        nc = coords[off:off + n] + he[off:off + n, 1:4]
        xt_l.append(h @ nc)
        pc = jnp.max(point_embeds[off:off + n], axis=0)
        ae = mlp(pc[None], aw1, ab1, aw2, ab2)[0]
        q = ae[:4]
        xr_l.append(q / jnp.sqrt(jnp.sum(q * q)))
        xo_l.append(ae[4])
        off += n
    return jnp.stack(xt_l), jnp.stack(xr_l), jnp.stack(xo_l)


if __name__ == "__main__":
    H = 32                    # hidden_size
    DIM_ACTIONS = 8           # 3 pos + 4 quat + 1 open
    npoints_in_batch = [6, 10]
    N = sum(npoints_in_batch)
    TEMP = 0.7                # exercise the 1/temp weight folding

    key = jax.random.PRNGKey(0)
    keys = jax.random.split(key, 10)

    point_embeds = jax.random.normal(keys[0], (N, H), jnp.float32)
    coords = jax.random.normal(keys[1], (N, 3), jnp.float32)

    # parameters stored as (in, out); biases as (1, out)  (x @ W + b == x @ W_pt.T + b)
    hw1 = 0.1 * jax.random.normal(keys[2], (H, H), jnp.float32)
    hb1 = 0.1 * jax.random.normal(keys[3], (1, H), jnp.float32)
    hw2 = 0.1 * jax.random.normal(keys[4], (H, 1 + 3), jnp.float32)
    hb2 = 0.1 * jax.random.normal(keys[5], (1, 1 + 3), jnp.float32)
    aw1 = 0.1 * jax.random.normal(keys[6], (H, H), jnp.float32)
    ab1 = 0.1 * jax.random.normal(keys[7], (1, H), jnp.float32)
    aw2 = 0.1 * jax.random.normal(keys[8], (H, DIM_ACTIONS - 3), jnp.float32)
    ab2 = 0.1 * jax.random.normal(keys[9], (1, DIM_ACTIONS - 3), jnp.float32)
    params = (hw1, hb1, hw2, hb2, aw1, ab1, aw2, ab2)

    xt, xr, xo = action_head_forward(point_embeds, coords, npoints_in_batch,
                                     params, temp=TEMP)
    jax.block_until_ready((xt, xr, xo))

    # Reference computed on the same bf16-quantized embeddings the kernel stores
    # in HBM (the rest of the math is f32 in both) -> tight tolerance holds.
    pe_q = point_embeds.astype(jnp.bfloat16).astype(jnp.float32)
    xt_ref, xr_ref, xo_ref = reference_forward(pe_q, coords, npoints_in_batch,
                                               params, temp=TEMP)

    assert xt.shape == (2, 3) and xr.shape == (2, 4) and xo.shape == (2,)
    assert jnp.allclose(xt, xt_ref, atol=1e-4, rtol=1e-4)
    assert jnp.allclose(xr, xr_ref, atol=1e-4, rtol=1e-4)
    assert jnp.allclose(xo, xo_ref, atol=1e-4, rtol=1e-4)

    print("KERNEL_OK")
</pallas_src>

<mosaic_0001>
module attributes {stable_mosaic.version = 11 : i64} {
  func.func @_action_head_kernel(%arg0: i32, %arg1: i32, %arg2: memref<2xi32, #tpu.memory_space<smem>>, %arg3: memref<1x32x16xbf16, #tpu.memory_space<vmem>>, %arg4: memref<1x3x16xf32, #tpu.memory_space<vmem>>, %arg5: memref<32x32xf32, #tpu.memory_space<vmem>>, %arg6: memref<32x1xf32, #tpu.memory_space<vmem>>, %arg7: memref<4x32xf32, #tpu.memory_space<vmem>>, %arg8: memref<4x1xf32, #tpu.memory_space<vmem>>, %arg9: memref<32x32xf32, #tpu.memory_space<vmem>>, %arg10: memref<32x1xf32, #tpu.memory_space<vmem>>, %arg11: memref<5x32xf32, #tpu.memory_space<vmem>>, %arg12: memref<5x1xf32, #tpu.memory_space<vmem>>, %arg13: memref<1x8x1xf32, #tpu.memory_space<vmem>>, %arg14: memref<1x1xf32, #tpu.memory_space<vmem>>, %arg15: memref<1x1xf32, #tpu.memory_space<vmem>>, %arg16: memref<3x1xf32, #tpu.memory_space<vmem>>, %arg17: memref<32x1xf32, #tpu.memory_space<vmem>>) attributes {dimension_semantics = [#tpu.dimension_semantics<parallel>, #tpu.dimension_semantics<arbitrary>], iteration_bounds = array<i64: 2, 1>, scalar_prefetch = 1 : i64, scratch_operands = 4 : i64, tpu.core_type = #tpu.core_type<tc>, window_params = [{transform_indices = @transform_0, window_bounds = array<i64: 1, 32, 16>}, {transform_indices = @transform_1, window_bounds = array<i64: 1, 3, 16>}, {pipeline_mode = #tpu.pipeline_mode<synchronous>, transform_indices = @transform_2, window_bounds = array<i64: 32, 32>}, {pipeline_mode = #tpu.pipeline_mode<synchronous>, transform_indices = @transform_3, window_bounds = array<i64: 32, 1>}, {pipeline_mode = #tpu.pipeline_mode<synchronous>, transform_indices = @transform_4, window_bounds = array<i64: 4, 32>}, {pipeline_mode = #tpu.pipeline_mode<synchronous>, transform_indices = @transform_5, window_bounds = array<i64: 4, 1>}, {pipeline_mode = #tpu.pipeline_mode<synchronous>, transform_indices = @transform_6, window_bounds = array<i64: 32, 32>}, {pipeline_mode = #tpu.pipeline_mode<synchronous>, transform_indices = @transform_7, window_bounds = array<i64: 32, 1>}, {pipeline_mode = #tpu.pipeline_mode<synchronous>, transform_indices = @transform_8, window_bounds = array<i64: 5, 32>}, {pipeline_mode = #tpu.pipeline_mode<synchronous>, transform_indices = @transform_9, window_bounds = array<i64: 5, 1>}, {transform_indices = @transform_10, window_bounds = array<i64: 1, 8, 1>}]} {
    %0 = arith.index_cast %arg0 : i32 to index
    %1 = memref.load %arg2[%0] : memref<2xi32, #tpu.memory_space<smem>>
    %c0_i32 = arith.constant 0 : i32
    %2 = arith.cmpi eq, %arg1, %c0_i32 : i32
    %3 = arith.extui %2 : i1 to i32
    %c0_i32_0 = arith.constant 0 : i32
    %4 = arith.cmpi ne, %3, %c0_i32_0 : i32
    scf.if %4 {
      %cst = arith.constant -1.000000e+30 : f32
      %12 = vector.broadcast %cst : f32 to vector<1x1xf32>
      %c0 = arith.constant 0 : index
      %c0_4 = arith.constant 0 : index
      %13 = vector.load %arg14[%c0, %c0_4] : memref<1x1xf32, #tpu.memory_space<vmem>>, vector<1x1xf32>
      tpu.vector_store %arg14[%c0, %c0_4], %12 {strides = array<i32>} : memref<1x1xf32, #tpu.memory_space<vmem>>, vector<1x1xf32>,
      %cst_5 = arith.constant 0.000000e+00 : f32
      %14 = vector.broadcast %cst_5 : f32 to vector<1x1xf32>
      %c0_6 = arith.constant 0 : index
      %c0_7 = arith.constant 0 : index
      %15 = vector.load %arg15[%c0_6, %c0_7] : memref<1x1xf32, #tpu.memory_space<vmem>>, vector<1x1xf32>
      tpu.vector_store %arg15[%c0_6, %c0_7], %14 {strides = array<i32>} : memref<1x1xf32, #tpu.memory_space<vmem>>, vector<1x1xf32>,
      %cst_8 = arith.constant 0.000000e+00 : f32
      %16 = vector.broadcast %cst_8 : f32 to vector<3x1xf32>
      %c0_9 = arith.constant 0 : index
      %c0_10 = arith.constant 0 : index
      %17 = vector.load %arg16[%c0_9, %c0_10] : memref<3x1xf32, #tpu.memory_space<vmem>>, vector<3x1xf32>
      tpu.vector_store %arg16[%c0_9, %c0_10], %16 {strides = array<i32>} : memref<3x1xf32, #tpu.memory_space<vmem>>, vector<3x1xf32>,
      %cst_11 = arith.constant -1.000000e+30 : f32
      %18 = vector.broadcast %cst_11 : f32 to vector<32x1xf32>
      %c0_12 = arith.constant 0 : index
      %c0_13 = arith.constant 0 : index
      %19 = vector.load %arg17[%c0_12, %c0_13] : memref<32x1xf32, #tpu.memory_space<vmem>>, vector<32x1xf32>
      tpu.vector_store %arg17[%c0_12, %c0_13], %18 {strides = array<i32>} : memref<32x1xf32, #tpu.memory_space<vmem>>, vector<32x1xf32>,
    } else {
    }
    %c16_i32 = arith.constant 16 : i32
    %5 = arith.muli %arg1, %c16_i32 : i32
    %6 = arith.cmpi slt, %5, %1 : i32
    %7 = arith.extui %6 : i1 to i32
    %c0_i32_1 = arith.constant 0 : i32
    %8 = arith.cmpi ne, %7, %c0_i32_1 : i32
    scf.if %8 {
      %c0 = arith.constant 0 : index
      %c0_4 = arith.constant 0 : index
      %c0_5 = arith.constant 0 : index
      %12 = vector.load %arg3[%c0, %c0_4, %c0_5] : memref<1x32x16xbf16, #tpu.memory_space<vmem>>, vector<1x32x16xbf16>
      %13 = vector.shape_cast %12 : vector<1x32x16xbf16> to vector<32x16xbf16>
      %14 = arith.extf %13 : vector<32x16xbf16> to vector<32x16xf32>
      %15 = tpu.iota {dimensions = array<i32: 1>} : vector<1x16xi32>
      %c16_i32_6 = arith.constant 16 : i32
      %16 = arith.muli %arg1, %c16_i32_6 : i32
      %17 = vector.broadcast %16 : i32 to vector<1x16xi32>
      %18 = arith.addi %15, %17 : vector<1x16xi32>
      %19 = vector.broadcast %1 : i32 to vector<1x16xi32>
      %20 = arith.cmpi slt, %18, %19 : vector<1x16xi32>
      %c0_7 = arith.constant 0 : index
      %c0_8 = arith.constant 0 : index
      %21 = vector.load %arg5[%c0_7, %c0_8] : memref<32x32xf32, #tpu.memory_space<vmem>>, vector<32x32xf32>
      %cst = arith.constant dense<0.000000e+00> : vector<32x16xf32>
      %22 = tpu.matmul %21, %14, %cst {dimension_numbers = #tpu.dot_dimension_numbers<[1], [0], [0], [1], [0, 0, 1, 1], [], []>} : vector<32x32xf32>, vector<32x16xf32>, vector<32x16xf32> -> vector<32x16xf32>
      %c0_9 = arith.constant 0 : index
      %c0_10 = arith.constant 0 : index
      %23 = vector.load %arg6[%c0_9, %c0_10] : memref<32x1xf32, #tpu.memory_space<vmem>>, vector<32x1xf32>
      %24 = vector.broadcast %23 : vector<32x1xf32> to vector<32x16xf32>
      %25 = arith.addf %22, %24 : vector<32x16xf32>
      %cst_11 = arith.constant 0.000000e+00 : f32
      %26 = vector.broadcast %cst_11 : f32 to vector<32x16xf32>
      %27 = arith.cmpf ogt, %25, %26 : vector<32x16xf32>
      %cst_12 = arith.constant 2.000000e-02 : f32
      %28 = vector.broadcast %cst_12 : f32 to vector<32x16xf32>
      %29 = arith.mulf %28, %25 : vector<32x16xf32>
      %30 = arith.select %27, %25, %29 : vector<32x16xi1>, vector<32x16xf32>
      %c0_13 = arith.constant 0 : index
      %c0_14 = arith.constant 0 : index
      %31 = vector.load %arg7[%c0_13, %c0_14] : memref<4x32xf32, #tpu.memory_space<vmem>>, vector<4x32xf32>
      %cst_15 = arith.constant dense<0.000000e+00> : vector<4x16xf32>
      %32 = tpu.matmul %31, %30, %cst_15 {dimension_numbers = #tpu.dot_dimension_numbers<[1], [0], [0], [1], [0, 0, 1, 1], [], []>} : vector<4x32xf32>, vector<32x16xf32>, vector<4x16xf32> -> vector<4x16xf32>
      %c0_16 = arith.constant 0 : index
      %c0_17 = arith.constant 0 : index
      %33 = vector.load %arg8[%c0_16, %c0_17] : memref<4x1xf32, #tpu.memory_space<vmem>>, vector<4x1xf32>
      %34 = vector.broadcast %33 : vector<4x1xf32> to vector<4x16xf32>
      %35 = arith.addf %32, %34 : vector<4x16xf32>
      %36 = vector.extract_strided_slice %35 {offsets = [0, 0], sizes = [1, 16], strides = [1, 1]} : vector<4x16xf32> to vector<1x16xf32>
      %cst_18 = arith.constant -1.000000e+30 : f32
      %37 = vector.broadcast %cst_18 : f32 to vector<1x16xf32>
      %38 = arith.select %20, %36, %37 : vector<1x16xi1>, vector<1x16xf32>
      %cst_19 = arith.constant dense<0xFF800000> : vector<1xf32>
      %39 = vector.multi_reduction <maximumf>, %38, %cst_19 [1] : vector<1x16xf32> to vector<1xf32>
      %40 = vector.shape_cast %39 : vector<1xf32> to vector<1x1xf32>
      %c0_20 = arith.constant 0 : index
      %c0_21 = arith.constant 0 : index
      %41 = vector.load %arg14[%c0_20, %c0_21] : memref<1x1xf32, #tpu.memory_space<vmem>>, vector<1x1xf32>
      %42 = arith.maximumf %41, %40 : vector<1x1xf32>
      %43 = arith.subf %41, %42 : vector<1x1xf32>
      %44 = math.exp %43 : vector<1x1xf32>
      %45 = vector.broadcast %42 : vector<1x1xf32> to vector<1x16xf32>
      %46 = arith.subf %38, %45 : vector<1x16xf32>
      %47 = math.exp %46 : vector<1x16xf32>
      %cst_22 = arith.constant 0.000000e+00 : f32
      %48 = vector.broadcast %cst_22 : f32 to vector<1x16xf32>
      %49 = arith.select %20, %47, %48 : vector<1x16xi1>, vector<1x16xf32>
      %c0_23 = arith.constant 0 : index
      %c0_24 = arith.constant 0 : index
      %50 = vector.load %arg15[%c0_23, %c0_24] : memref<1x1xf32, #tpu.memory_space<vmem>>, vector<1x1xf32>
      %51 = arith.mulf %44, %50 : vector<1x1xf32>
      %cst_25 = arith.constant dense<0.000000e+00> : vector<1xf32>
      %52 = vector.multi_reduction <add>, %49, %cst_25 [1] : vector<1x16xf32> to vector<1xf32>
      %53 = vector.shape_cast %52 : vector<1xf32> to vector<1x1xf32>
      %54 = arith.addf %51, %53 : vector<1x1xf32>
      %c0_26 = arith.constant 0 : index
      %c0_27 = arith.constant 0 : index
      %55 = vector.load %arg15[%c0_26, %c0_27] : memref<1x1xf32, #tpu.memory_space<vmem>>, vector<1x1xf32>
      tpu.vector_store %arg15[%c0_26, %c0_27], %54 {strides = array<i32>} : memref<1x1xf32, #tpu.memory_space<vmem>>, vector<1x1xf32>,
      %c0_28 = arith.constant 0 : index
      %c0_29 = arith.constant 0 : index
      %c0_30 = arith.constant 0 : index
      %56 = vector.load %arg4[%c0_28, %c0_29, %c0_30] : memref<1x3x16xf32, #tpu.memory_space<vmem>>, vector<1x3x16xf32>
      %57 = vector.shape_cast %56 : vector<1x3x16xf32> to vector<3x16xf32>
      %58 = vector.extract_strided_slice %35 {offsets = [1, 0], sizes = [3, 16], strides = [1, 1]} : vector<4x16xf32> to vector<3x16xf32>
      %59 = arith.addf %57, %58 : vector<3x16xf32>
      %c0_31 = arith.constant 0 : index
      %c0_32 = arith.constant 0 : index
      %60 = vector.load %arg16[%c0_31, %c0_32] : memref<3x1xf32, #tpu.memory_space<vmem>>, vector<3x1xf32>
      %61 = vector.broadcast %44 : vector<1x1xf32> to vector<3x1xf32>
      %62 = arith.mulf %61, %60 : vector<3x1xf32>
      %63 = vector.broadcast %49 : vector<1x16xf32> to vector<3x16xf32>
      %64 = arith.mulf %63, %59 : vector<3x16xf32>
      %cst_33 = arith.constant dense<0.000000e+00> : vector<3xf32>
      %65 = vector.multi_reduction <add>, %64, %cst_33 [1] : vector<3x16xf32> to vector<3xf32>
      %66 = vector.shape_cast %65 : vector<3xf32> to vector<3x1xf32>
      %67 = arith.addf %62, %66 : vector<3x1xf32>
      %c0_34 = arith.constant 0 : index
      %c0_35 = arith.constant 0 : index
      %68 = vector.load %arg16[%c0_34, %c0_35] : memref<3x1xf32, #tpu.memory_space<vmem>>, vector<3x1xf32>
      tpu.vector_store %arg16[%c0_34, %c0_35], %67 {strides = array<i32>} : memref<3x1xf32, #tpu.memory_space<vmem>>, vector<3x1xf32>,
      %c0_36 = arith.constant 0 : index
      %c0_37 = arith.constant 0 : index
      %69 = vector.load %arg14[%c0_36, %c0_37] : memref<1x1xf32, #tpu.memory_space<vmem>>, vector<1x1xf32>
      tpu.vector_store %arg14[%c0_36, %c0_37], %42 {strides = array<i32>} : memref<1x1xf32, #tpu.memory_space<vmem>>, vector<1x1xf32>,
      %cst_38 = arith.constant -1.000000e+30 : f32
      %70 = vector.shape_cast %20 : vector<1x16xi1> to vector<1x16xi1>
      %71 = vector.broadcast %70 : vector<1x16xi1> to vector<32x16xi1>
      %72 = vector.broadcast %cst_38 : f32 to vector<32x16xf32>
      %73 = arith.select %71, %14, %72 : vector<32x16xi1>, vector<32x16xf32>
      %c0_39 = arith.constant 0 : index
      %c0_40 = arith.constant 0 : index
      %74 = vector.load %arg17[%c0_39, %c0_40] : memref<32x1xf32, #tpu.memory_space<vmem>>, vector<32x1xf32>
      %cst_41 = arith.constant dense<0xFF800000> : vector<32xf32>
      %75 = vector.multi_reduction <maximumf>, %73, %cst_41 [1] : vector<32x16xf32> to vector<32xf32>
      %76 = vector.shape_cast %75 : vector<32xf32> to vector<32x1xf32>
      %77 = arith.maximumf %74, %76 : vector<32x1xf32>
      %c0_42 = arith.constant 0 : index
      %c0_43 = arith.constant 0 : index
      %78 = vector.load %arg17[%c0_42, %c0_43] : memref<32x1xf32, #tpu.memory_space<vmem>>, vector<32x1xf32>
      tpu.vector_store %arg17[%c0_42, %c0_43], %77 {strides = array<i32>} : memref<32x1xf32, #tpu.memory_space<vmem>>, vector<32x1xf32>,
    } else {
    }
    %c0_i32_2 = arith.constant 0 : i32
    %9 = arith.cmpi eq, %arg1, %c0_i32_2 : i32
    %10 = arith.extui %9 : i1 to i32
    %c0_i32_3 = arith.constant 0 : i32
    %11 = arith.cmpi ne, %10, %c0_i32_3 : i32
    scf.if %11 {
      %c0_i32_4 = arith.constant 0 : i32
      %12 = arith.cmpi sgt, %1, %c0_i32_4 : i32
      %13 = arith.extui %12 : i1 to i32
      %14 = arith.sitofp %13 : i32 to f32
      %c0 = arith.constant 0 : index
      %c0_5 = arith.constant 0 : index
      %15 = vector.load %arg15[%c0, %c0_5] : memref<1x1xf32, #tpu.memory_space<vmem>>, vector<1x1xf32>
      %cst = arith.constant 1.000000e-30 : f32
      %16 = vector.broadcast %cst : f32 to vector<1x1xf32>
      %17 = arith.maximumf %15, %16 : vector<1x1xf32>
      %18 = tpu.reciprocal %17 {approx = true} : vector<1x1xf32> -> vector<1x1xf32>
      %19 = arith.mulf %17, %18 : vector<1x1xf32>
      %cst_6 = arith.constant 2.000000e+00 : f32
      %20 = vector.broadcast %cst_6 : f32 to vector<1x1xf32>
      %21 = arith.subf %20, %19 : vector<1x1xf32>
      %22 = arith.mulf %18, %21 : vector<1x1xf32>
      %c0_7 = arith.constant 0 : index
      %c0_8 = arith.constant 0 : index
      %23 = vector.load %arg16[%c0_7, %c0_8] : memref<3x1xf32, #tpu.memory_space<vmem>>, vector<3x1xf32>
      %24 = vector.broadcast %22 : vector<1x1xf32> to vector<3x1xf32>
      %25 = arith.mulf %23, %24 : vector<3x1xf32>
      %26 = vector.broadcast %14 : f32 to vector<3x1xf32>
      %27 = arith.mulf %25, %26 : vector<3x1xf32>
      %c0_9 = arith.constant 0 : index
      %c0_10 = arith.constant 0 : index
      %28 = vector.load %arg17[%c0_9, %c0_10] : memref<32x1xf32, #tpu.memory_space<vmem>>, vector<32x1xf32>
      %29 = vector.broadcast %14 : f32 to vector<32x1xf32>
      %30 = arith.mulf %28, %29 : vector<32x1xf32>
      %c0_11 = arith.constant 0 : index
      %c0_12 = arith.constant 0 : index
      %31 = vector.load %arg9[%c0_11, %c0_12] : memref<32x32xf32, #tpu.memory_space<vmem>>, vector<32x32xf32>
      %cst_13 = arith.constant dense<0.000000e+00> : vector<32x1xf32>
      %32 = tpu.matmul %31, %30, %cst_13 {dimension_numbers = #tpu.dot_dimension_numbers<[1], [0], [0], [1], [0, 0, 1, 1], [], []>} : vector<32x32xf32>, vector<32x1xf32>, vector<32x1xf32> -> vector<32x1xf32>
      %c0_14 = arith.constant 0 : index
      %c0_15 = arith.constant 0 : index
      %33 = vector.load %arg10[%c0_14, %c0_15] : memref<32x1xf32, #tpu.memory_space<vmem>>, vector<32x1xf32>
      %34 = arith.addf %32, %33 : vector<32x1xf32>
      %cst_16 = arith.constant 0.000000e+00 : f32
      %35 = vector.broadcast %cst_16 : f32 to vector<32x1xf32>
      %36 = arith.cmpf ogt, %34, %35 : vector<32x1xf32>
      %cst_17 = arith.constant 2.000000e-02 : f32
      %37 = vector.broadcast %cst_17 : f32 to vector<32x1xf32>
      %38 = arith.mulf %37, %34 : vector<32x1xf32>
      %39 = arith.select %36, %34, %38 : vector<32x1xi1>, vector<32x1xf32>
      %c0_18 = arith.constant 0 : index
      %c0_19 = arith.constant 0 : index
      %40 = vector.load %arg11[%c0_18, %c0_19] : memref<5x32xf32, #tpu.memory_space<vmem>>, vector<5x32xf32>
      %cst_20 = arith.constant dense<0.000000e+00> : vector<5x1xf32>
      %41 = tpu.matmul %40, %39, %cst_20 {dimension_numbers = #tpu.dot_dimension_numbers<[1], [0], [0], [1], [0, 0, 1, 1], [], []>} : vector<5x32xf32>, vector<32x1xf32>, vector<5x1xf32> -> vector<5x1xf32>
      %c0_21 = arith.constant 0 : index
      %c0_22 = arith.constant 0 : index
      %42 = vector.load %arg12[%c0_21, %c0_22] : memref<5x1xf32, #tpu.memory_space<vmem>>, vector<5x1xf32>
      %43 = arith.addf %41, %42 : vector<5x1xf32>
      %44 = vector.extract_strided_slice %43 {offsets = [0, 0], sizes = [4, 1], strides = [1, 1]} : vector<5x1xf32> to vector<4x1xf32>
      %45 = arith.mulf %44, %44 : vector<4x1xf32>
      %cst_23 = arith.constant dense<0.000000e+00> : vector<1xf32>
      %46 = vector.multi_reduction <add>, %45, %cst_23 [0] : vector<4x1xf32> to vector<1xf32>
      %47 = vector.shape_cast %46 : vector<1xf32> to vector<1x1xf32>
      %cst_24 = arith.constant 1.000000e-24 : f32
      %48 = vector.broadcast %cst_24 : f32 to vector<1x1xf32>
      %49 = arith.maximumf %47, %48 : vector<1x1xf32>
      %50 = math.rsqrt %49 : vector<1x1xf32>
      %51 = vector.broadcast %50 : vector<1x1xf32> to vector<4x1xf32>
      %52 = arith.mulf %44, %51 : vector<4x1xf32>
      %c0_25 = arith.constant 0 : index
      %c0_26 = arith.constant 0 : index
      %c0_27 = arith.constant 0 : index
      %53 = vector.load %arg13[%c0_25, %c0_26, %c0_27] : memref<1x8x1xf32, #tpu.memory_space<vmem>>, vector<1x3x1xf32>
      %54 = vector.shape_cast %53 : vector<1x3x1xf32> to vector<3x1xf32>
      %55 = vector.shape_cast %27 : vector<3x1xf32> to vector<1x3x1xf32>
      tpu.vector_store %arg13[%c0_25, %c0_26, %c0_27], %55 {strides = array<i32>} : memref<1x8x1xf32, #tpu.memory_space<vmem>>, vector<1x3x1xf32>,
      %c0_28 = arith.constant 0 : index
      %c3 = arith.constant 3 : index
      %c0_29 = arith.constant 0 : index
      %56 = vector.load %arg13[%c0_28, %c3, %c0_29] : memref<1x8x1xf32, #tpu.memory_space<vmem>>, vector<1x4x1xf32>
      %57 = vector.shape_cast %56 : vector<1x4x1xf32> to vector<4x1xf32>
      %58 = vector.shape_cast %52 : vector<4x1xf32> to vector<1x4x1xf32>
      tpu.vector_store %arg13[%c0_28, %c3, %c0_29], %58 {strides = array<i32>} : memref<1x8x1xf32, #tpu.memory_space<vmem>>, vector<1x4x1xf32>,
      %59 = vector.extract_strided_slice %43 {offsets = [4, 0], sizes = [1, 1], strides = [1, 1]} : vector<5x1xf32> to vector<1x1xf32>
      %c0_30 = arith.constant 0 : index
      %c7 = arith.constant 7 : index
      %c0_31 = arith.constant 0 : index
      %60 = vector.load %arg13[%c0_30, %c7, %c0_31] : memref<1x8x1xf32, #tpu.memory_space<vmem>>, vector<1x1x1xf32>
      %61 = vector.shape_cast %60 : vector<1x1x1xf32> to vector<1x1xf32>
      %62 = vector.shape_cast %59 : vector<1x1xf32> to vector<1x1x1xf32>
      tpu.vector_store %arg13[%c0_30, %c7, %c0_31], %62 {strides = array<i32>} : memref<1x8x1xf32, #tpu.memory_space<vmem>>, vector<1x1x1xf32>,
    } else {
    }
    return
  }
  func.func @transform_0(%arg0: i32, %arg1: i32, %arg2: memref<2xi32, #tpu.memory_space<smem>>) -> (i32, i32, i32) {
    %c0_i32 = arith.constant 0 : i32
    %c0_i32_0 = arith.constant 0 : i32
    return %arg0, %c0_i32, %arg1 : i32, i32, i32
  }
  func.func @transform_1(%arg0: i32, %arg1: i32, %arg2: memref<2xi32, #tpu.memory_space<smem>>) -> (i32, i32, i32) {
    %c0_i32 = arith.constant 0 : i32
    %c0_i32_0 = arith.constant 0 : i32
    return %arg0, %c0_i32, %arg1 : i32, i32, i32
  }
  func.func @transform_2(%arg0: i32, %arg1: i32, %arg2: memref<2xi32, #tpu.memory_space<smem>>) -> (i32, i32) {
    %c0_i32 = arith.constant 0 : i32
    %c0_i32_0 = arith.constant 0 : i32
    %c0_i32_1 = arith.constant 0 : i32
    return %c0_i32, %c0_i32_0 : i32, i32
  }
  func.func @transform_3(%arg0: i32, %arg1: i32, %arg2: memref<2xi32, #tpu.memory_space<smem>>) -> (i32, i32) {
    %c0_i32 = arith.constant 0 : i32
    %c0_i32_0 = arith.constant 0 : i32
    %c0_i32_1 = arith.constant 0 : i32
    return %c0_i32, %c0_i32_0 : i32, i32
  }
  func.func @transform_4(%arg0: i32, %arg1: i32, %arg2: memref<2xi32, #tpu.memory_space<smem>>) -> (i32, i32) {
    %c0_i32 = arith.constant 0 : i32
    %c0_i32_0 = arith.constant 0 : i32
    %c0_i32_1 = arith.constant 0 : i32
    return %c0_i32, %c0_i32_0 : i32, i32
  }
  func.func @transform_5(%arg0: i32, %arg1: i32, %arg2: memref<2xi32, #tpu.memory_space<smem>>) -> (i32, i32) {
    %c0_i32 = arith.constant 0 : i32
    %c0_i32_0 = arith.constant 0 : i32
    %c0_i32_1 = arith.constant 0 : i32
    return %c0_i32, %c0_i32_0 : i32, i32
  }
  func.func @transform_6(%arg0: i32, %arg1: i32, %arg2: memref<2xi32, #tpu.memory_space<smem>>) -> (i32, i32) {
    %c0_i32 = arith.constant 0 : i32
    %c0_i32_0 = arith.constant 0 : i32
    %c0_i32_1 = arith.constant 0 : i32
    return %c0_i32, %c0_i32_0 : i32, i32
  }
  func.func @transform_7(%arg0: i32, %arg1: i32, %arg2: memref<2xi32, #tpu.memory_space<smem>>) -> (i32, i32) {
    %c0_i32 = arith.constant 0 : i32
    %c0_i32_0 = arith.constant 0 : i32
    %c0_i32_1 = arith.constant 0 : i32
    return %c0_i32, %c0_i32_0 : i32, i32
  }
  func.func @transform_8(%arg0: i32, %arg1: i32, %arg2: memref<2xi32, #tpu.memory_space<smem>>) -> (i32, i32) {
    %c0_i32 = arith.constant 0 : i32
    %c0_i32_0 = arith.constant 0 : i32
    %c0_i32_1 = arith.constant 0 : i32
    return %c0_i32, %c0_i32_0 : i32, i32
  }
  func.func @transform_9(%arg0: i32, %arg1: i32, %arg2: memref<2xi32, #tpu.memory_space<smem>>) -> (i32, i32) {
    %c0_i32 = arith.constant 0 : i32
    %c0_i32_0 = arith.constant 0 : i32
    %c0_i32_1 = arith.constant 0 : i32
    return %c0_i32, %c0_i32_0 : i32, i32
  }
  func.func @transform_10(%arg0: i32, %arg1: i32, %arg2: memref<2xi32, #tpu.memory_space<smem>>) -> (i32, i32, i32) {
    %c0_i32 = arith.constant 0 : i32
    %c0_i32_0 = arith.constant 0 : i32
    %c0_i32_1 = arith.constant 0 : i32
    return %arg0, %c0_i32, %c0_i32_0 : i32, i32, i32
  }
}

</mosaic_0001>

<bundles_post_ra>
// kernel: tpu_custom_call.1
= control target key start
LH: loop header
LB: loop body
LE: loop exit
PB: predicated region body
PF: predicated region fallthrough
CT: control target
= control target key end

     0   :  { %s992_s20 = smov [#allocation7]   ;;  %s1241_s0 = inlined_call_operand.vmem [shape: s32[2], index: 0, kind: input, shape index: {}]   ;;  %s1242_s1 = inlined_call_operand.vmem [shape: bf16[2,32,16], index: 1, kind: input, shape index: {}]   ;;  %s1243_s2 = inlined_call_operand.vmem [shape: f32[2,3,16], index: 2, kind: input, shape index: {}]   ;;  %s1244_s3 = inlined_call_operand.vmem [shape: f32[32,32], index: 3, kind: input, shape index: {}]   ;;  %s1245_s4 = inlined_call_operand.vmem [shape: f32[32,1], index: 4, kind: input, shape index: {}]   ;;  %s1246_s5 = inlined_call_operand.vmem [shape: f32[4,32], index: 5, kind: input, shape index: {}]   ;;  %s1247_s6 = inlined_call_operand.vmem [shape: f32[4,1], index: 6, kind: input, shape index: {}]   ;;  %s1248_s7 = inlined_call_operand.vmem [shape: f32[32,32], index: 7, kind: input, shape index: {}]   ;;  %s1249_s8 = inlined_call_operand.vmem [shape: f32[32,1], index: 8, kind: input, shape index: {}]   ;;  %s1250_s9 = inlined_call_operand.vmem [shape: f32[5,32], index: 9, kind: input, shape index: {}]   ;;  %s1251_s10 = inlined_call_operand.vmem [shape: f32[5,1], index: 10, kind: input, shape index: {}]   ;;  %s1252_s11 = inlined_call_operand.vmem [shape: f32[2,8,1], index: 11, kind: output, shape index: {}]  }
   0x1   :  { %s17_s19 = sshll.u32 %s1241_s0, 4  ;;  %s18_s19 = int_to_ptr.vmem [resolvable:$true] %s17_s19 }
   0x2   :  { %20 = dma.vmem_to_smem %s18_s19, 16, %s992_s20, [#allocation6] }
   0x3   :  { %978 = dma.done.wait [#allocation6], 16 }
   0x4   :  { %979 = vsyncadd [#allocation6], 4294967280 }
   0x5   :  { %23 = sfence }
   0x6   :  { %s1059_s21 = smov 0   ;;  %s1061_s22 = smov 0  }
   0x7   :  { %s1063_s23 = smov 0  }
   0x8 LB: > { %s41_s0 = sadd.s32 1, %s986_s22  ;;  %p870_p0 = scmp.ge.s32.totalorder %s990_s23, 1  ;;  %s990_s23 = sphi %s1063_s23, %s29_s23   ;;  %s986_s22 = sphi %s1061_s22, %s1256_s22   ;;  %s982_s21 = sphi %s1059_s21, %s1255_s21  }
   0x9   : > { %p43_p1 = scmp.ge.s32.totalorder %s41_s0, 2  ;;  %p352_p2 = scmp.lt.s32.totalorder %s990_s23, 3 }
   0xb   : > { %s1258_s0 = smov (%p43_p1, %s41_s0), 0  ;;  %p353_p3 = pnand %p870_p0, %p352_p2 }
   0xc   : > { %p399_p4 = scmp.lt.s32.totalorder (!%p353_p3), %s982_s21, 1  ;;  %s1077_s24 = sld [smem:[#allocation7 + %s982_s21]] (!%p353_p3) }
   0xd   : > { %356 = sbr.rel (%p353_p3) target bundleno = 1029 (0x405), region = 60 }
  0x12   : > { %vm423_vm0 = vcmask 0   ;;  %v993_v0 = vmov -1e+30   ;;  %vm426_vm1 = vcmask 2048   ;;  %vm428_vm2 = vcmask 7168   ;;  %s1260_s21 = smov (!%p399_p4, %s982_s21), 1 }
  0x13   : > { %424 = vst.msk [vmem:[#allocation2] sm:$0x1] %vm423_vm0, %v993_v0  ;;  %v994_v1 = vmov 0.0   ;;  %s889_s25 = sshll.u32 %s1260_s21, 4  ;;  %s873_s26 = sshll.u32 %s1260_s21, 2 }
  0x14   : > { %425 = vst.msk [vmem:[#allocation3] sm:$0x1] %vm423_vm0, %v994_v1  ;;  %s406_s29 = scalar_lea.vmem %s1242_s1, %s889_s25  ;;  %s1089_s13 = scalar_lea.vmem %s1243_s2, %s873_s26 }
  0x15   : > { %427 = vst.msk [vmem:[#allocation4] sm:$0x7] %vm426_vm1, %v994_v1  ;;  %s874_s14 = sshll.u32 %s1260_s21, 3  ;;  %p876_p5 = scmp.le.s32.totalorder %s1077_s24, 0 }
  0x16   : > { %429 = vst.msk [vmem:[#allocation5] sm:$0xff] %vm428_vm2, %v993_v0  ;;  %s1096_s17 = scalar_lea.vmem %s1252_s11, %s874_s14 }
  0x17   : > { %430 = vst.msk [vmem:[#allocation5 + $0x8] sm:$0xff] %vm428_vm2, %v993_v0  ;;  %437 = sbr.rel (%p876_p5) target bundleno = 695 (0x2b7), region = 68 }
  0x18   : > { %431 = vst.msk [vmem:[#allocation5 + $0x10] sm:$0xff] %vm428_vm2, %v993_v0 }
  0x19   : > { %432 = vst.msk [vmem:[#allocation5 + $0x18] sm:$0xff] %vm428_vm2, %v993_v0 }
  0x1c   : > { %v898_v2 = vld [vmem:[%s406_s29 + $0x8] sm:$0xff]   ;;  %v891_v3 = vld [vmem:[%s406_s29] sm:$0xff]   ;;  %v995_v6 = vmov 0   ;;  %v459_v7 = vld [vmem:[%s1245_s4 + $0x18] sm:$0xff]  ;;  %vm480_vm3 = vcmask 261120   ;;  %v446_v39 = vlaneseq  ;;  %v450_v41 = vstv %s1077_s24 }
  0x1d   : > { %v1100_v4 = vunpack.c.h.bf16 %v898_v2  ;;  %v1102_v5 = vunpack.c.l.bf16 %v898_v2  ;;  %943 = vset.pattern.permute.xlu0 %v995_v6  ;;  %944 = vset.pattern.permute.xlu1 %v995_v6  ;;  %v457_v8 = vld [vmem:[%s1245_s4 + $0x8] sm:$0xff]  ;;  %v1112_v9 = vunpack.c.h.bf16 %v891_v3  ;;  %v1117_v10 = vunpack.c.l.bf16 %v891_v3  ;;  %v454_v11 = vld [vmem:[%s1244_s3 + $0x10] sm:$0xff]  ;;  %v452_v14 = vld [vmem:[%s1244_s3] sm:$0xff] }
  0x1e   : > { %477 = vperm.xlu0 %943, %v459_v7   ;;  %945 = vset.pattern.permute.xlu2 %v995_v6  ;;  %v453_v12 = vld [vmem:[%s1244_s3 + $0x8] sm:$0xff]  ;;  %v458_v13 = vld [vmem:[%s1245_s4 + $0x10] sm:$0xff]  ;;  %v456_v15 = vld [vmem:[%s1245_s4] sm:$0xff]  ;;  %v447_v40 = vand.u32 127, %v446_v39  ;;  %vm565_vm9 = vcmask 122880   ;;  %vm622_vm10 = vcmask 130048  }
  0x1f   : > { %900 = vmatpush.msra.mxu3 %v1100_v4  ;;  %899 = vmatpush.msra.mxu2 %v1100_v4  ;;  %v455_v16 = vld [vmem:[%s1244_s3 + $0x18] sm:$0xff]  ;;  %v535_v17 = vld [vmem:[%s1247_s6] sm:$0xf]  ;;  %vm604_vm11 = vcmask 124928  }
  0x20   : > { %505 = vmatpush.msra.mxu0 %v1100_v4  ;;  %467 = vperm.xlu1 %944, %v457_v8   ;;  %v534_v37 = vld [vmem:[%s1246_s5] sm:$0xf]  ;;  %vm1156_vm8 = vcmp.lt.s32.totalorder %v447_v40, %v450_v41 }
  0x21   : > { %902 = vmatpush.msra.mxu3 %v1102_v5  ;;  %901 = vmatpush.msra.mxu2 %v1102_v5  ;;  %v569_v48 = vld [vmem:[#allocation2] sm:$0x1]  ;;  %v614_v52 = vsel %vm1156_vm8, %v1117_v10, -1e+30  ;;  %v615_v54 = vsel %vm1156_vm8, %v1112_v9, -1e+30 }
  0x22   : > { %506 = vmatpush.msra.mxu0 %v1102_v5  ;;  %538 = vperm.xlu2 %945, %v535_v17   ;;  %v623_v53 = vsel %vm622_vm10, %v614_v52, -inf  ;;  %v626_v55 = vsel %vm622_vm10, %v615_v54, -inf  ;;  %v617_v56 = vsel %vm1156_vm8, %v1100_v4, -1e+30  ;;  %v592_v63 = vld [vmem:[%s1089_s13] sm:$0x7] }
  0x23   : > { %904 = vmatpush.msra.mxu3 %v1112_v9  ;;  %903 = vmatpush.msra.mxu2 %v1112_v9  ;;  %v632_v57 = vsel %vm622_vm10, %v617_v56, -inf  ;;  %v616_v7 = vsel %vm1156_vm8, %v1102_v5, -1e+30 }
  0x24   : > { %507 = vmatpush.msra.mxu0 %v1112_v9  ;;  %v629_v9 = vsel %vm622_vm10, %v616_v7, -inf }
  0x25   : > { %906 = vmatpush.msra.mxu3 %v1117_v10  ;;  %905 = vmatpush.msra.mxu2 %v1117_v10 }
  0x26   : > { %879 = vmatmul.msk.f32.vlgmr.msra.gmra.mxu3 %vm480_vm3, %v454_v11  ;;  %878 = vmatmul.msk.f32.vlgmr.msra.gmra.mxu2 %vm480_vm3, %v453_v12 }
  0x27   : > { %508 = vmatpush.msra.mxu0 %v1117_v10  ;;  %472 = vperm.xlu0 %943, %v458_v13   ;;  %v618_v10 = vld [vmem:[#allocation5] sm:$0xff]  ;;  %v619_v13 = vld [vmem:[#allocation5 + $0x8] sm:$0xff] }
  0x28   : > { %877 = vmatmul.msk.f32.vlgmr.msra.gmra.mxu0 %vm480_vm3, %v452_v14  ;;  %462 = vperm.xlu1 %944, %v456_v15  }
  0x2e   : > { %880 = vmatmul.msk.f32.gmra.mxu3 %vm480_vm3, %v455_v16  ;;  %v621_v16 = vld [vmem:[#allocation5 + $0x18] sm:$0xff] }
  0x7c   : > { %v539_v42 = vpop.permute.xlu2 %538 }
  0x90   : > { %v478_v18 = vpop.permute.xlu0 %477 }
  0x92   : > { %v468_v19 = vpop.permute.xlu1 %467 }
  0x99   : > { %v473_v21 = vpop.permute.xlu0 %472 }
  0x9a   : > { %v463_v24 = vpop.permute.xlu1 %462 }
  0xa5   : > { %v510_v25 = vpop.f32.mrf.mxu0 }
  0xa6   : > { %v511_v29 = vadd.f32 %v510_v25, %v463_v24  ;;  %v597_v24 = vld [vmem:[#allocation4] sm:$0x7] }
  0xa8   : > { %v526_v35 = vmul.f32 0.02, %v511_v29  ;;  %vm522_vm7 = vcmp.gt.f32.partialorder %v511_v29, 0.0 }
  0xa9   : > { %v516_v20 = vpop.f32.mrf.mxu3  ;;  %v513_v22 = vpop.f32.mrf.mxu2 }
  0xaa   : > { %v517_v23 = vadd.f32 %v516_v20, %v473_v21  ;;  %v514_v27 = vadd.f32 %v513_v22, %v468_v19  ;;  %v530_v38 = vsel %vm522_vm7, %v511_v29, %v526_v35  ;;  %v584_v20 = vld [vmem:[#allocation3] sm:$0x1]  ;;  %v620_v29 = vld [vmem:[#allocation5 + $0x10] sm:$0xff] }
  0xac   : > { %v528_v31 = vmul.f32 0.02, %v517_v23  ;;  %vm524_vm5 = vcmp.gt.f32.partialorder %v517_v23, 0.0  ;;  %v527_v33 = vmul.f32 0.02, %v514_v27  ;;  %vm523_vm6 = vcmp.gt.f32.partialorder %v514_v27, 0.0 }
  0xae   : > { %v532_v34 = vsel %vm524_vm5, %v517_v23, %v528_v31  ;;  %v531_v36 = vsel %vm523_vm6, %v514_v27, %v527_v33 }
  0xb1   : > { %v519_v26 = vpop.f32.mrf.mxu3 }
  0xb2   : > { %v520_v28 = vadd.f32 %v519_v26, %v478_v18 }
  0xb4   : > { %vm525_vm4 = vcmp.gt.f32.partialorder %v520_v28, 0.0  ;;  %v529_v30 = vmul.f32 0.02, %v520_v28 }
  0xb6   : > { %v533_v32 = vsel %vm525_vm4, %v520_v28, %v529_v30 }
  0xb7   : > { %556 = vmatpush.msra.mxu1 %v533_v32 }
  0xb9   : > { %557 = vmatpush.msra.mxu1 %v532_v34 }
  0xbb   : > { %558 = vmatpush.msra.mxu1 %v531_v36 }
  0xbd   : > { %559 = vmatpush.msra.mxu1 %v530_v38 }
  0xbe   : > { %881 = vmatmul.msk.f32.vlgmr.msra.gmra.mxu1 %vm480_vm3, %v534_v37 }
 0x13b   : > { %v561_v43 = vpop.f32.mrf.mxu1 }
 0x13c   : > { %v562_v45 = vadd.f32 %v561_v43, %v539_v42 }
 0x13e   : > { %v564_v46 = vsel %vm1156_vm8, %v562_v45, -1e+30  ;;  %v594_v62 = vrot.slane %v562_v45, 1 }
 0x13f   : > { %v566_v47 = vsel %vm565_vm9, %v564_v46, -inf }
 0x140   : > { %567 = vmax.xlane.f32.xlu2 %v566_v47  ;;  %v596_v6 = vadd.f32 %v594_v62, %v592_v63 }
 0x148   : > { %624 = vmax.xlane.f32.xlu2 %v623_v53 }
 0x150   : > { %627 = vmax.xlane.f32.xlu2 %v626_v55 }
 0x158   : > { %633 = vmax.xlane.f32.xlu2 %v632_v57 }
 0x1b3   : > { %v568_v49 = vpop.xlane.xlu2 %567 }
 0x1b4   : > { %v570_v50 = vmax.f32 %v569_v48, %v568_v49 }
 0x1b6   : > { %v571_v51 = vsub.f32 %v569_v48, %v570_v50  ;;  %611 = vst.msk [vmem:[#allocation2] sm:$0x1] %vm423_vm0, %v570_v50  ;;  %576 = vperm.xlu0 %943, %v570_v50  }
 0x1b8   : > { %v572_v5 = vmul.f32 1.442695, %v571_v51 }
 0x1bb   : > { %v625_v11 = vpop.xlane.xlu2 %624 }
 0x1bc   : > { %v635_v12 = vmax.f32 %v618_v10, %v625_v11 }
 0x1be   : > { %640 = vst.msk [vmem:[#allocation5] sm:$0xff] %vm428_vm2, %v635_v12 }
 0x1c3   : > { %v628_v14 = vpop.xlane.xlu2 %627 }
 0x1c4   : > { %v636_v15 = vmax.f32 %v619_v13, %v628_v14 }
 0x1c6   : > { %641 = vst.msk [vmem:[#allocation5 + $0x8] sm:$0xff] %vm428_vm2, %v636_v15 }
 0x1cb   : > { %v634_v17 = vpop.xlane.xlu2 %633 }
 0x1cc   : > { %v638_v18 = vmax.f32 %v621_v16, %v634_v17 }
 0x1ce   : > { %643 = vst.msk [vmem:[#allocation5 + $0x18] sm:$0xff] %vm428_vm2, %v638_v18 }
 0x228   : > { %v577_v58 = vpop.permute.xlu0 %576 }
 0x229   : > { %v579_v59 = vperm.slane %v577_v58, 0 }
 0x22b   : > { %v580_v60 = vsub.f32 %v564_v46, %v579_v59 }
 0x22d   : > { %v581_v61 = vmul.f32 1.442695, %v580_v60 }
 0x22f   : > { %946 = vpow2.f32 %v581_v61 }
 0x230   : > { %948 = vpow2.f32 %v572_v5 }
 0x235   : > { %v947_v0 = vpop.eup %946 }
 0x236   : > { %v583_v1 = vsel %vm1156_vm8, %v947_v0, 0.0  ;;  %v949_v19 = vpop.eup %948 }
 0x237   : > { %v586_v2 = vsel %vm565_vm9, %v583_v1, 0.0  ;;  %v602_v3 = vperm.slane %v583_v1, 0  ;;  %v585_v21 = vmul.f32 %v949_v19, %v584_v20  ;;  %v599_v22 = vperm.slane %v949_v19, 0 }
 0x238   : > { %587 = vadd.xlane.f32.xlu1 %v586_v2 }
 0x239   : > { %v603_v4 = vmul.f32 %v602_v3, %v596_v6  ;;  %v601_v26 = vmul.f32 %v599_v22, %v597_v24 }
 0x23b   : > { %v605_v8 = vsel %vm604_vm11, %v603_v4, 0.0 }
 0x23c   : > { %606 = vadd.xlane.f32.xlu0 %v605_v8 }
 0x240   : > { %630 = vmax.xlane.f32.xlu1 %v629_v9 }
 0x2ab   : > { %v588_v23 = vpop.xlane.xlu1 %587 }
 0x2ac   : > { %v589_v25 = vadd.f32 %v588_v23, %v585_v21 }
 0x2ae   : > { %591 = vst.msk [vmem:[#allocation3] sm:$0x1] %vm423_vm0, %v589_v25 }
 0x2af   : > { %v607_v27 = vpop.xlane.xlu0 %606 }
 0x2b0   : > { %v608_v28 = vadd.f32 %v607_v27, %v601_v26 }
 0x2b2   : > { %610 = vst.msk [vmem:[#allocation4] sm:$0x7] %vm426_vm1, %v608_v28 }
 0x2b3   : > { %v631_v30 = vpop.xlane.xlu1 %630 }
 0x2b4   : > { %v637_v31 = vmax.f32 %v620_v29, %v631_v30 }
 0x2b6   : > { %642 = vst.msk [vmem:[#allocation5 + $0x10] sm:$0xff] %vm428_vm2, %v637_v31 }
 0x2b7 PF: > { %p647_p6 = scmp.gt.s32.totalorder %s1077_s24, 0  ;;  %v650_v32 = vld [vmem:[#allocation3] sm:$0x1]  ;;  %v673_v46 = vld [vmem:[%s1248_s7 + $0x10] sm:$0xff]  ;;  %vm679_vm12 = vcmask 261120   ;;  %v672_v47 = vld [vmem:[%s1248_s7 + $0x8] sm:$0xff] }
 0x2b8   : > { %v651_v33 = vmax.f32 %v650_v32, 1e-30  ;;  %v663_v40 = vld [vmem:[#allocation5] sm:$0xff]  ;;  %v674_v54 = vld [vmem:[%s1248_s7 + $0x18] sm:$0xff]  ;;  %v677_v56 = vld [vmem:[%s1249_s8 + $0x10] sm:$0xff]  ;;  %vm759_vm2 = vcmask 3072  }
 0x2b9   : > { %s648_s13 = scalar_select %p647_p6, 1, 0  ;;  %v664_v37 = vld [vmem:[#allocation5 + $0x8] sm:$0xff]  ;;  %v656_v49 = vld [vmem:[#allocation4] sm:$0x7]  ;;  %v678_v57 = vld [vmem:[%s1249_s8 + $0x18] sm:$0xff] }
 0x2ba   : > { %950 = vrcp.f32 %v651_v33  ;;  %v671_v50 = vld [vmem:[%s1248_s7] sm:$0xff]  ;;  %v676_v58 = vld [vmem:[%s1249_s8 + $0x8] sm:$0xff] }
 0x2bb   : > { %s649_s27 = scvt.s32.f32 %s648_s13  ;;  %v666_v34 = vld [vmem:[#allocation5 + $0x18] sm:$0xff] }
 0x2bc   : > { %v675_v62 = vld [vmem:[%s1249_s8] sm:$0xff] }
 0x2bd   : > { %v665_v35 = vld [vmem:[#allocation5 + $0x10] sm:$0xff]  ;;  %v661_v36 = vstv %s649_s27  ;;  %v733_v11 = vld [vmem:[%s1250_s9] sm:$0x1f] }
 0x2be   : > { %v670_v38 = vmul.f32 %v666_v34, %v661_v36  ;;  %v669_v39 = vmul.f32 %v665_v35, %v661_v36  ;;  %v668_v42 = vmul.f32 %v664_v37, %v661_v36  ;;  %v667_v44 = vmul.f32 %v663_v40, %v661_v36  ;;  %v734_v13 = vld [vmem:[%s1251_s10] sm:$0x1f] }
 0x2c0   : > { %v951_v41 = vpop.eup %950  ;;  %908 = vmatpush.msra.mxu3 %v670_v38  ;;  %907 = vmatpush.msra.mxu2 %v670_v38 }
 0x2c1   : > { %v653_v43 = vmul.f32 %v951_v41, %v651_v33  ;;  %704 = vmatpush.msra.mxu0 %v670_v38 }
 0x2c2   : > { %910 = vmatpush.msra.mxu3 %v669_v39  ;;  %909 = vmatpush.msra.mxu2 %v669_v39 }
 0x2c3   : > { %v654_v45 = vsub.f32 2.0, %v653_v43  ;;  %705 = vmatpush.msra.mxu0 %v669_v39 }
 0x2c4   : > { %912 = vmatpush.msra.mxu3 %v668_v42  ;;  %911 = vmatpush.msra.mxu2 %v668_v42 }
 0x2c5   : > { %v655_v48 = vmul.f32 %v951_v41, %v654_v45  ;;  %706 = vmatpush.msra.mxu0 %v668_v42 }
 0x2c6   : > { %914 = vmatpush.msra.mxu3 %v667_v44  ;;  %913 = vmatpush.msra.mxu2 %v667_v44 }
 0x2c7   : > { %v658_v51 = vperm.slane %v655_v48, 0  ;;  %884 = vmatmul.msk.f32.vlgmr.msra.gmra.mxu3 %vm679_vm12, %v673_v46  ;;  %883 = vmatmul.msk.f32.vlgmr.msra.gmra.mxu2 %vm679_vm12, %v672_v47 }
 0x2c8   : > { %707 = vmatpush.msra.mxu0 %v667_v44 }
 0x2c9   : > { %v660_v52 = vmul.f32 %v658_v51, %v656_v49  ;;  %882 = vmatmul.msk.f32.vlgmr.msra.gmra.mxu0 %vm679_vm12, %v671_v50 }
 0x2cb   : > { %v662_v53 = vmul.f32 %v661_v36, %v660_v52 }
 0x2cd   : > { %780 = vst.msk [vmem:[%s1096_s17] sm:$0x7] %vm426_vm1, %v662_v53  ;;  %vm782_vm1 = vcmask 4100  }
 0x2cf   : > { %885 = vmatmul.msk.f32.gmra.mxu3 %vm679_vm12, %v674_v54 }
 0x346   : > { %v709_v63 = vpop.f32.mrf.mxu0 }
 0x347   : > { %v710_v2 = vadd.f32 %v709_v63, %v675_v62 }
 0x349   : > { %v725_v9 = vmul.f32 0.02, %v710_v2  ;;  %vm721_vm0 = vcmp.gt.f32.partialorder %v710_v2, 0.0 }
 0x34a   : > { %v715_v55 = vpop.f32.mrf.mxu3  ;;  %v712_v59 = vpop.f32.mrf.mxu2 }
 0x34b   : > { %v716_v60 = vadd.f32 %v715_v55, %v677_v56  ;;  %v713_v1 = vadd.f32 %v712_v59, %v676_v58  ;;  %v729_v12 = vsel %vm721_vm0, %v710_v2, %v725_v9 }
 0x34d   : > { %v727_v6 = vmul.f32 0.02, %v716_v60  ;;  %vm723_vm14 = vcmp.gt.f32.partialorder %v716_v60, 0.0  ;;  %v726_v7 = vmul.f32 0.02, %v713_v1  ;;  %vm722_vm15 = vcmp.gt.f32.partialorder %v713_v1, 0.0 }
 0x34f   : > { %v731_v8 = vsel %vm723_vm14, %v716_v60, %v727_v6  ;;  %v730_v10 = vsel %vm722_vm15, %v713_v1, %v726_v7 }
 0x352   : > { %v718_v61 = vpop.f32.mrf.mxu3 }
 0x353   : > { %v719_v0 = vadd.f32 %v718_v61, %v678_v57 }
 0x355   : > { %vm724_vm13 = vcmp.gt.f32.partialorder %v719_v0, 0.0  ;;  %v728_v3 = vmul.f32 0.02, %v719_v0 }
 0x357   : > { %v732_v4 = vsel %vm724_vm13, %v719_v0, %v728_v3 }
 0x358   : > { %750 = vmatpush.msra.mxu1 %v732_v4 }
 0x35a   : > { %751 = vmatpush.msra.mxu1 %v731_v8 }
 0x35c   : > { %752 = vmatpush.msra.mxu1 %v730_v10 }
 0x35e   : > { %753 = vmatpush.msra.mxu1 %v729_v12 }
 0x35f   : > { %886 = vmatmul.msk.f32.vlgmr.msra.gmra.mxu1 %vm679_vm12, %v733_v11 }
 0x3dc   : > { %v755_v14 = vpop.f32.mrf.mxu1 }
 0x3dd   : > { %v756_v15 = vadd.f32 %v755_v14, %v734_v13 }
 0x3df   : > { %v758_v16 = vmul.f32 %v756_v15, %v756_v15  ;;  %783 = vst.msk [vmem:[%s1096_s17 + $0x3] sm:$0x10] %vm782_vm1, %v756_v15 }
 0x3e1   : > { %v760_v17 = vsel %vm759_vm2, %v758_v16, 0.0 }
 0x3e2   : > { %v761_v18 = vrot.slane %v760_v17, 4 }
 0x3e4   : > { %v762_v5 = vadd.f32 %v761_v18, %v760_v17 }
 0x3e6   : > { %v763_v19 = vrot.slane %v762_v5, 2 }
 0x3e8   : > { %v764_v20 = vadd.f32 %v763_v19, %v762_v5 }
 0x3ea   : > { %v765_v21 = vrot.slane %v764_v20, 1 }
 0x3ec   : > { %v766_v22 = vadd.f32 %v765_v21, %v764_v20 }
 0x3ee   : > { %v767_v23 = vmax.f32 %v766_v22, 1e-24 }
 0x3f0   : > { %952 = vrsqrt.f32 %v767_v23  ;;  %vm774_vm4 = vweird.f32 %v767_v23 }
 0x3f6   : > { %v953_v24 = vpop.eup %952 }
 0x3f7   : > { %v769_v25 = vmul.f32 %v953_v24, %v767_v23  ;;  %vm775_vm3 = vweird.f32 %v953_v24 }
 0x3f8   : > { %vm776_vm5 = vmor %vm774_vm4, %vm775_vm3 }
 0x3f9   : > { %v770_v26 = vmul.f32 %v953_v24, %v769_v25 }
 0x3fb   : > { %v771_v27 = vmul.f32 0.5, %v770_v26 }
 0x3fd   : > { %v772_v28 = vsub.f32 1.5, %v771_v27 }
 0x3ff   : > { %v773_v29 = vmul.f32 %v953_v24, %v772_v28 }
 0x401   : > { %v777_v30 = vsel %vm776_vm5, %v953_v24, %v773_v29 }
 0x402   : > { %v778_v31 = vmul.f32 %v777_v30, %v756_v15 }
 0x404   : > { %781 = vst.msk [vmem:[%s1096_s17 + $0x3] sm:$0xf] %vm759_vm2, %v778_v31 }
 0x405 PF: > { %s29_s23 = sadd.s32 1, %s990_s23   ;;  %s1255_s21 = smov %s986_s22 }
 0x406   : > { %p26_p7 = scmp.ge.s32.totalorder %s29_s23, 4   ;;  %s1256_s22 = smov %s1258_s0 }
 0x408   :  { %28 = sbr.rel (!%p26_p7) target bundleno = 8 (0x8), region = 105 }

</bundles_post_ra>
